<compile_context>
chip_gen: v6e
topology: v6e:2x2x1
jax: 0.10.0
libtpu: 0.0.40
codegen_flags: <defaults>
</compile_context>

<pallas_src>
import functools

import numpy as np
import jax
import jax.numpy as jnp
from jax import lax
from jax.experimental import pallas as pl
from jax.experimental.pallas import tpu as pltpu


# ----------------------------------------------------------------------------
# Host-side constant: validity masks for the 8 NON-CENTER taps of a 3x3 "same"
# conv in the flattened (h*W + w) lane layout.  Shape (8, H*W), f32 {0,1}.
# Row order matches the kernel's (kh, kw) loop skipping the center tap.
# ----------------------------------------------------------------------------
def _tap_masks(H, W):
    hh, ww = np.meshgrid(np.arange(H), np.arange(W), indexing="ij")
    hh = hh.reshape(-1)
    ww = ww.reshape(-1)
    rows = []
    for kh in range(3):
        for kw in range(3):
            if (kh, kw) == (1, 1):
                continue
            dh, dw = kh - 1, kw - 1
            ok = (hh + dh >= 0) & (hh + dh < H) & (ww + dw >= 0) & (ww + dw < W)
            rows.append(ok.astype(np.float32))
    return np.stack(rows, axis=0)  # (8, H*W)


# ----------------------------------------------------------------------------
# Fused kernel: build im2col operand via lane rolls + boundary masks, one MXU
# matmul (conv), batch stats, normalize, SiLU.  Single grid step, all in VMEM.
# ----------------------------------------------------------------------------
def _fused_kernel(x_ref, w_ref, bgb_ref, m_ref, o_ref, col_ref, *, W):
    # x_ref   : (Cin, N*H*W)      f32, batch folded into lanes
    # w_ref   : (Cout, 9*Cin)     bf16, tap-major repacked conv weight
    # bgb_ref : (Cout, 3)         f32, columns = [conv bias, gamma, beta]
    # m_ref   : (8, N*H*W)        f32, boundary masks for the 8 non-center taps
    # o_ref   : (N, Cout, H*W)    f32 output
    # col_ref : (9*Cin, N*H*W)    f32 scratch (im2col operand)
    N, Cout, HW = o_ref.shape
    Cin, NHW = x_ref.shape

    x = x_ref[...]  # (Cin, NHW)

    # 9 taps: lane roll (XLU) + boundary mask (VPU), stacked along the
    # contraction axis in VMEM scratch.  Wrapped lanes (image edges, cross-image
    # and array wrap-around) are exactly the masked positions.
    mi = 0
    for kh in range(3):
        for kw in range(3):
            dh, dw = kh - 1, kw - 1
            off = dh * W + dw  # static
            if off == 0:
                t = x
            else:
                # want t[p] = x[p + off]; roll(x, s)[p] = x[p - s]
                t = pltpu.roll(x, shift=(-off) % NHW, axis=1)
                t = t * m_ref[mi:mi + 1, :]
                mi += 1
            r = (kh * 3 + kw) * Cin
            col_ref[r:r + Cin, :] = t

    # Single MXU matmul: (Cout, 9*Cin) x (9*Cin, N*HW), bf16 in / f32 accumulate.
    im2col = col_ref[...].astype(jnp.bfloat16)
    y = jnp.dot(w_ref[...], im2col, preferred_element_type=jnp.float32)  # (Cout, NHW)
    y = y + bgb_ref[:, 0:1]  # conv bias, added once (f32)

    # BatchNorm (training mode: biased batch stats over N,H,W), one-pass var.
    inv_cnt = 1.0 / float(NHW)
    mean = jnp.sum(y, axis=1, keepdims=True) * inv_cnt
    var = jnp.sum(y * y, axis=1, keepdims=True) * inv_cnt - mean * mean

    scale = bgb_ref[:, 1:2] * lax.rsqrt(var + 1e-5)  # gamma / sqrt(var + eps)
    shift = bgb_ref[:, 2:3] - mean * scale           # beta  - mean * scale

    z = y * scale + shift
    # SiLU: exp and approximate reciprocal both run on the EUP slot.
    out = z * pl.reciprocal(1.0 + jnp.exp(-z), approx=True)

    # Lane-dense stores: 256-wide, lane-aligned static slices of the 512 lanes.
    for n in range(N):
        o_ref[n] = out[:, n * HW:(n + 1) * HW]


# ----------------------------------------------------------------------------
# Wrapper: tiny repacks + free reshapes around one pallas_call.
# ----------------------------------------------------------------------------
@jax.jit
def connection3_forward(x_nchw, w_oihw, bias, gamma, beta):
    N, Cin, H, W = x_nchw.shape
    Cout = w_oihw.shape[0]
    HW = H * W
    NHW = N * HW

    # (Cin, N*H*W): fold batch into the lane axis (tiny ~8 KB transpose).
    x = jnp.transpose(x_nchw, (1, 0, 2, 3)).reshape(Cin, NHW).astype(jnp.float32)

    # Conv weight (Cout, Cin, 3, 3) -> (Cout, 9*Cin), tap-major row order
    # matching the kernel's im2col layout ((kh*3+kw)*Cin + cin).  bf16 for MXU.
    w = jnp.transpose(w_oihw, (0, 2, 3, 1)).reshape(Cout, 9 * Cin).astype(jnp.bfloat16)

    # Pre-pack conv bias, BN gamma, BN beta into one (Cout, 3) operand.
    bgb = jnp.stack([bias, gamma, beta], axis=1).astype(jnp.float32)

    # Boundary masks for the 8 non-center taps, tiled across the batch.
    masks = jnp.asarray(np.tile(_tap_masks(H, W), (1, N)))  # (8, NHW)

    out = pl.pallas_call(
        functools.partial(_fused_kernel, W=W),
        out_shape=jax.ShapeDtypeStruct((N, Cout, HW), jnp.float32),
        in_specs=[pl.BlockSpec(memory_space=pltpu.MemorySpace.VMEM)] * 4,
        out_specs=pl.BlockSpec(memory_space=pltpu.MemorySpace.VMEM),
        scratch_shapes=[pltpu.VMEM((9 * Cin, NHW), jnp.float32)],
    )(x, w, bgb, masks)

    return out.reshape(N, Cout, H, W)  # free reshape back to NCHW


# ----------------------------------------------------------------------------
# Pure-JAX f32 reference for correctness check
# ----------------------------------------------------------------------------
def connection3_reference(x_nchw, w_oihw, bias, gamma, beta):
    x = jnp.transpose(x_nchw, (0, 2, 3, 1)).astype(jnp.float32)
    w = jnp.transpose(w_oihw, (2, 3, 1, 0)).astype(jnp.float32)
    y = lax.conv_general_dilated(
        x, w, window_strides=(1, 1), padding="SAME",
        dimension_numbers=("NHWC", "HWIO", "NHWC")) + bias
    mean = jnp.mean(y, axis=(0, 1, 2))
    var = jnp.var(y, axis=(0, 1, 2))
    z = (y - mean) / jnp.sqrt(var + 1e-5) * gamma + beta
    z = z * jax.nn.sigmoid(z)
    return jnp.transpose(z, (0, 3, 1, 2))


if __name__ == "__main__":
    # small shapes consistent with the module: N=2, Cin=4, Cout=8, H=W=16
    N, Cin, Cout, H, W = 2, 4, 8, 16, 16

    key = jax.random.PRNGKey(0)
    k_x, k_w, k_b = jax.random.split(key, 3)

    x = jax.random.normal(k_x, (N, Cin, H, W), jnp.float32)

    # deterministic PyTorch-like Conv2d init: U(-1/sqrt(fan_in), 1/sqrt(fan_in))
    fan_in = Cin * 3 * 3
    bound = 1.0 / (fan_in ** 0.5)
    w_oihw = jax.random.uniform(k_w, (Cout, Cin, 3, 3), jnp.float32,
                                minval=-bound, maxval=bound)
    bias = jax.random.uniform(k_b, (Cout,), jnp.float32,
                              minval=-bound, maxval=bound)
    gamma = jnp.ones((Cout,), jnp.float32)   # BatchNorm2d weight init
    beta = jnp.zeros((Cout,), jnp.float32)   # BatchNorm2d bias init

    out = connection3_forward(x, w_oihw, bias, gamma, beta)
    out = jax.block_until_ready(out)

    ref = connection3_reference(x, w_oihw, bias, gamma, beta)
    assert out.shape == (N, Cout, H, W)
    # bf16 MXU operands + approx EUP reciprocal -> relaxed tolerance vs f32 ref.
    assert jnp.allclose(out, ref, atol=5e-2, rtol=5e-2), "mismatch vs reference"

    print("KERNEL_OK")
</pallas_src>

<mosaic_0001>
module attributes {stable_mosaic.version = 11 : i64} {
  func.func @_fused_kernel(%arg0: memref<4x512xf32, #tpu.memory_space<vmem>>, %arg1: memref<8x36xbf16, #tpu.memory_space<vmem>>, %arg2: memref<8x3xf32, #tpu.memory_space<vmem>>, %arg3: memref<8x512xf32, #tpu.memory_space<vmem>>, %arg4: memref<2x8x256xf32, #tpu.memory_space<vmem>>, %arg5: memref<36x512xf32, #tpu.memory_space<vmem>>) attributes {dimension_semantics = [], scalar_prefetch = 0 : i64, scratch_operands = 1 : i64, tpu.core_type = #tpu.core_type<tc>} {
    %c0 = arith.constant 0 : index
    %c0_0 = arith.constant 0 : index
    %0 = vector.load %arg0[%c0, %c0_0] : memref<4x512xf32, #tpu.memory_space<vmem>>, vector<4x512xf32>
    %c17_i32 = arith.constant 17 : i32
    %1 = tpu.dynamic_rotate %0 by %c17_i32 dim 1 : vector<4x512xf32>, i32 -> vector<4x512xf32>
    %c0_1 = arith.constant 0 : index
    %c0_2 = arith.constant 0 : index
    %2 = vector.load %arg3[%c0_1, %c0_2] : memref<8x512xf32, #tpu.memory_space<vmem>>, vector<1x512xf32>
    %3 = vector.broadcast %2 : vector<1x512xf32> to vector<4x512xf32>
    %4 = arith.mulf %1, %3 : vector<4x512xf32>
    %c0_3 = arith.constant 0 : index
    %c0_4 = arith.constant 0 : index
    %5 = vector.load %arg5[%c0_3, %c0_4] : memref<36x512xf32, #tpu.memory_space<vmem>>, vector<4x512xf32>
    tpu.vector_store %arg5[%c0_3, %c0_4], %4 {strides = array<i32>} : memref<36x512xf32, #tpu.memory_space<vmem>>, vector<4x512xf32>,
    %c16_i32 = arith.constant 16 : i32
    %6 = tpu.dynamic_rotate %0 by %c16_i32 dim 1 : vector<4x512xf32>, i32 -> vector<4x512xf32>
    %c1 = arith.constant 1 : index
    %c0_5 = arith.constant 0 : index
    %7 = vector.load %arg3[%c1, %c0_5] : memref<8x512xf32, #tpu.memory_space<vmem>>, vector<1x512xf32>
    %8 = vector.broadcast %7 : vector<1x512xf32> to vector<4x512xf32>
    %9 = arith.mulf %6, %8 : vector<4x512xf32>
    %c4 = arith.constant 4 : index
    %c0_6 = arith.constant 0 : index
    %10 = vector.load %arg5[%c4, %c0_6] : memref<36x512xf32, #tpu.memory_space<vmem>>, vector<4x512xf32>
    tpu.vector_store %arg5[%c4, %c0_6], %9 {strides = array<i32>} : memref<36x512xf32, #tpu.memory_space<vmem>>, vector<4x512xf32>,
    %c15_i32 = arith.constant 15 : i32
    %11 = tpu.dynamic_rotate %0 by %c15_i32 dim 1 : vector<4x512xf32>, i32 -> vector<4x512xf32>
    %c2 = arith.constant 2 : index
    %c0_7 = arith.constant 0 : index
    %12 = vector.load %arg3[%c2, %c0_7] : memref<8x512xf32, #tpu.memory_space<vmem>>, vector<1x512xf32>
    %13 = vector.broadcast %12 : vector<1x512xf32> to vector<4x512xf32>
    %14 = arith.mulf %11, %13 : vector<4x512xf32>
    %c8 = arith.constant 8 : index
    %c0_8 = arith.constant 0 : index
    %15 = vector.load %arg5[%c8, %c0_8] : memref<36x512xf32, #tpu.memory_space<vmem>>, vector<4x512xf32>
    tpu.vector_store %arg5[%c8, %c0_8], %14 {strides = array<i32>} : memref<36x512xf32, #tpu.memory_space<vmem>>, vector<4x512xf32>,
    %c1_i32 = arith.constant 1 : i32
    %16 = tpu.dynamic_rotate %0 by %c1_i32 dim 1 : vector<4x512xf32>, i32 -> vector<4x512xf32>
    %c3 = arith.constant 3 : index
    %c0_9 = arith.constant 0 : index
    %17 = vector.load %arg3[%c3, %c0_9] : memref<8x512xf32, #tpu.memory_space<vmem>>, vector<1x512xf32>
    %18 = vector.broadcast %17 : vector<1x512xf32> to vector<4x512xf32>
    %19 = arith.mulf %16, %18 : vector<4x512xf32>
    %c12 = arith.constant 12 : index
    %c0_10 = arith.constant 0 : index
    %20 = vector.load %arg5[%c12, %c0_10] : memref<36x512xf32, #tpu.memory_space<vmem>>, vector<4x512xf32>
    tpu.vector_store %arg5[%c12, %c0_10], %19 {strides = array<i32>} : memref<36x512xf32, #tpu.memory_space<vmem>>, vector<4x512xf32>,
    %c16 = arith.constant 16 : index
    %c0_11 = arith.constant 0 : index
    %21 = vector.load %arg5[%c16, %c0_11] : memref<36x512xf32, #tpu.memory_space<vmem>>, vector<4x512xf32>
    tpu.vector_store %arg5[%c16, %c0_11], %0 {strides = array<i32>} : memref<36x512xf32, #tpu.memory_space<vmem>>, vector<4x512xf32>,
    %c511_i32 = arith.constant 511 : i32
    %22 = tpu.dynamic_rotate %0 by %c511_i32 dim 1 : vector<4x512xf32>, i32 -> vector<4x512xf32>
    %c4_12 = arith.constant 4 : index
    %c0_13 = arith.constant 0 : index
    %23 = vector.load %arg3[%c4_12, %c0_13] : memref<8x512xf32, #tpu.memory_space<vmem>>, vector<1x512xf32>
    %24 = vector.broadcast %23 : vector<1x512xf32> to vector<4x512xf32>
    %25 = arith.mulf %22, %24 : vector<4x512xf32>
    %c20 = arith.constant 20 : index
    %c0_14 = arith.constant 0 : index
    %26 = vector.load %arg5[%c20, %c0_14] : memref<36x512xf32, #tpu.memory_space<vmem>>, vector<4x512xf32>
    tpu.vector_store %arg5[%c20, %c0_14], %25 {strides = array<i32>} : memref<36x512xf32, #tpu.memory_space<vmem>>, vector<4x512xf32>,
    %c497_i32 = arith.constant 497 : i32
    %27 = tpu.dynamic_rotate %0 by %c497_i32 dim 1 : vector<4x512xf32>, i32 -> vector<4x512xf32>
    %c5 = arith.constant 5 : index
    %c0_15 = arith.constant 0 : index
    %28 = vector.load %arg3[%c5, %c0_15] : memref<8x512xf32, #tpu.memory_space<vmem>>, vector<1x512xf32>
    %29 = vector.broadcast %28 : vector<1x512xf32> to vector<4x512xf32>
    %30 = arith.mulf %27, %29 : vector<4x512xf32>
    %c24 = arith.constant 24 : index
    %c0_16 = arith.constant 0 : index
    %31 = vector.load %arg5[%c24, %c0_16] : memref<36x512xf32, #tpu.memory_space<vmem>>, vector<4x512xf32>
    tpu.vector_store %arg5[%c24, %c0_16], %30 {strides = array<i32>} : memref<36x512xf32, #tpu.memory_space<vmem>>, vector<4x512xf32>,
    %c496_i32 = arith.constant 496 : i32
    %32 = tpu.dynamic_rotate %0 by %c496_i32 dim 1 : vector<4x512xf32>, i32 -> vector<4x512xf32>
    %c6 = arith.constant 6 : index
    %c0_17 = arith.constant 0 : index
    %33 = vector.load %arg3[%c6, %c0_17] : memref<8x512xf32, #tpu.memory_space<vmem>>, vector<1x512xf32>
    %34 = vector.broadcast %33 : vector<1x512xf32> to vector<4x512xf32>
    %35 = arith.mulf %32, %34 : vector<4x512xf32>
    %c28 = arith.constant 28 : index
    %c0_18 = arith.constant 0 : index
    %36 = vector.load %arg5[%c28, %c0_18] : memref<36x512xf32, #tpu.memory_space<vmem>>, vector<4x512xf32>
    tpu.vector_store %arg5[%c28, %c0_18], %35 {strides = array<i32>} : memref<36x512xf32, #tpu.memory_space<vmem>>, vector<4x512xf32>,
    %c495_i32 = arith.constant 495 : i32
    %37 = tpu.dynamic_rotate %0 by %c495_i32 dim 1 : vector<4x512xf32>, i32 -> vector<4x512xf32>
    %c7 = arith.constant 7 : index
    %c0_19 = arith.constant 0 : index
    %38 = vector.load %arg3[%c7, %c0_19] : memref<8x512xf32, #tpu.memory_space<vmem>>, vector<1x512xf32>
    %39 = vector.broadcast %38 : vector<1x512xf32> to vector<4x512xf32>
    %40 = arith.mulf %37, %39 : vector<4x512xf32>
    %c32 = arith.constant 32 : index
    %c0_20 = arith.constant 0 : index
    %41 = vector.load %arg5[%c32, %c0_20] : memref<36x512xf32, #tpu.memory_space<vmem>>, vector<4x512xf32>
    tpu.vector_store %arg5[%c32, %c0_20], %40 {strides = array<i32>} : memref<36x512xf32, #tpu.memory_space<vmem>>, vector<4x512xf32>,
    %c0_21 = arith.constant 0 : index
    %c0_22 = arith.constant 0 : index
    %42 = vector.load %arg5[%c0_21, %c0_22] : memref<36x512xf32, #tpu.memory_space<vmem>>, vector<36x512xf32>
    %43 = arith.truncf %42 : vector<36x512xf32> to vector<36x512xbf16>
    %c0_23 = arith.constant 0 : index
    %c0_24 = arith.constant 0 : index
    %44 = vector.load %arg1[%c0_23, %c0_24] : memref<8x36xbf16, #tpu.memory_space<vmem>>, vector<8x36xbf16>
    %cst = arith.constant dense<0.000000e+00> : vector<8x512xf32>
    %45 = tpu.matmul %44, %43, %cst {dimension_numbers = #tpu.dot_dimension_numbers<[1], [0], [0], [1], [0, 0, 1, 1], [], []>} : vector<8x36xbf16>, vector<36x512xbf16>, vector<8x512xf32> -> vector<8x512xf32>
    %c0_25 = arith.constant 0 : index
    %c0_26 = arith.constant 0 : index
    %46 = vector.load %arg2[%c0_25, %c0_26] : memref<8x3xf32, #tpu.memory_space<vmem>>, vector<8x1xf32>
    %47 = vector.broadcast %46 : vector<8x1xf32> to vector<8x512xf32>
    %48 = arith.addf %45, %47 : vector<8x512xf32>
    %cst_27 = arith.constant dense<0.000000e+00> : vector<8xf32>
    %49 = vector.multi_reduction <add>, %48, %cst_27 [1] : vector<8x512xf32> to vector<8xf32>
    %50 = vector.shape_cast %49 : vector<8xf32> to vector<8x1xf32>
    %cst_28 = arith.constant 0.001953125 : f32
    %51 = vector.broadcast %cst_28 : f32 to vector<8x1xf32>
    %52 = arith.mulf %50, %51 : vector<8x1xf32>
    %53 = arith.mulf %48, %48 : vector<8x512xf32>
    %cst_29 = arith.constant dense<0.000000e+00> : vector<8xf32>
    %54 = vector.multi_reduction <add>, %53, %cst_29 [1] : vector<8x512xf32> to vector<8xf32>
    %55 = vector.shape_cast %54 : vector<8xf32> to vector<8x1xf32>
    %cst_30 = arith.constant 0.001953125 : f32
    %56 = vector.broadcast %cst_30 : f32 to vector<8x1xf32>
    %57 = arith.mulf %55, %56 : vector<8x1xf32>
    %58 = arith.mulf %52, %52 : vector<8x1xf32>
    %59 = arith.subf %57, %58 : vector<8x1xf32>
    %c0_31 = arith.constant 0 : index
    %c1_32 = arith.constant 1 : index
    %60 = vector.load %arg2[%c0_31, %c1_32] : memref<8x3xf32, #tpu.memory_space<vmem>>, vector<8x1xf32>
    %cst_33 = arith.constant 9.99999974E-6 : f32
    %61 = vector.broadcast %cst_33 : f32 to vector<8x1xf32>
    %62 = arith.addf %59, %61 : vector<8x1xf32>
    %63 = math.rsqrt %62 : vector<8x1xf32>
    %64 = arith.mulf %60, %63 : vector<8x1xf32>
    %c0_34 = arith.constant 0 : index
    %c2_35 = arith.constant 2 : index
    %65 = vector.load %arg2[%c0_34, %c2_35] : memref<8x3xf32, #tpu.memory_space<vmem>>, vector<8x1xf32>
    %66 = arith.mulf %52, %64 : vector<8x1xf32>
    %67 = arith.subf %65, %66 : vector<8x1xf32>
    %68 = vector.broadcast %64 : vector<8x1xf32> to vector<8x512xf32>
    %69 = arith.mulf %48, %68 : vector<8x512xf32>
    %70 = vector.broadcast %67 : vector<8x1xf32> to vector<8x512xf32>
    %71 = arith.addf %69, %70 : vector<8x512xf32>
    %cst_36 = arith.constant 0.000000e+00 : f32
    %72 = vector.broadcast %cst_36 : f32 to vector<8x512xf32>
    %73 = arith.subf %72, %71 : vector<8x512xf32>
    %74 = math.exp %73 : vector<8x512xf32>
    %cst_37 = arith.constant 1.000000e+00 : f32
    %75 = vector.broadcast %cst_37 : f32 to vector<8x512xf32>
    %76 = arith.addf %75, %74 : vector<8x512xf32>
    %77 = tpu.reciprocal %76 {approx = true} : vector<8x512xf32> -> vector<8x512xf32>
    %78 = arith.mulf %71, %77 : vector<8x512xf32>
    %79 = vector.extract_strided_slice %78 {offsets = [0, 0], sizes = [8, 256], strides = [1, 1]} : vector<8x512xf32> to vector<8x256xf32>
    %c0_38 = arith.constant 0 : index
    %c0_39 = arith.constant 0 : index
    %c0_40 = arith.constant 0 : index
    %80 = vector.load %arg4[%c0_38, %c0_39, %c0_40] : memref<2x8x256xf32, #tpu.memory_space<vmem>>, vector<1x8x256xf32>
    %81 = vector.shape_cast %80 : vector<1x8x256xf32> to vector<8x256xf32>
    %82 = vector.shape_cast %79 : vector<8x256xf32> to vector<1x8x256xf32>
    tpu.vector_store %arg4[%c0_38, %c0_39, %c0_40], %82 {strides = array<i32>} : memref<2x8x256xf32, #tpu.memory_space<vmem>>, vector<1x8x256xf32>,
    %83 = vector.extract_strided_slice %78 {offsets = [0, 256], sizes = [8, 256], strides = [1, 1]} : vector<8x512xf32> to vector<8x256xf32>
    %c1_41 = arith.constant 1 : index
    %c0_42 = arith.constant 0 : index
    %c0_43 = arith.constant 0 : index
    %84 = vector.load %arg4[%c1_41, %c0_42, %c0_43] : memref<2x8x256xf32, #tpu.memory_space<vmem>>, vector<1x8x256xf32>
    %85 = vector.shape_cast %84 : vector<1x8x256xf32> to vector<8x256xf32>
    %86 = vector.shape_cast %83 : vector<8x256xf32> to vector<1x8x256xf32>
    tpu.vector_store %arg4[%c1_41, %c0_42, %c0_43], %86 {strides = array<i32>} : memref<2x8x256xf32, #tpu.memory_space<vmem>>, vector<1x8x256xf32>,
    return
  }
}

</mosaic_0001>

<bundles_post_ra>
// kernel: connection3_forward.1
= control target key start
LH: loop header
LB: loop body
LE: loop exit
PB: predicated region body
PF: predicated region fallthrough
CT: control target
= control target key end

     0   :  { %s695_s19 = smov 111   ;;  %s696_s20 = smov 127   ;;  %v703_v4 = vmov 0   ;;  %v34_v6 = vlaneseq  ;;  %vm474_vm3 = vcmask 1041408   ;;  %vm470_vm9 = vcmask 293888   ;;  %s991_s0 = inlined_call_operand.vmem [shape: f32[4,512], index: 0, kind: input, shape index: {}]   ;;  %s992_s2 = inlined_call_operand.vmem [shape: f32[8,3], index: 2, kind: input, shape index: {}]   ;;  %s993_s3 = inlined_call_operand.vmem [shape: f32[8,512], index: 3, kind: input, shape index: {}]   ;;  %s994_s1 = inlined_call_operand.vmem [shape: bf16[8,36], index: 1, kind: input, shape index: {}]   ;;  %s995_s4 = inlined_call_operand.vmem [shape: f32[2,8,256], index: 4, kind: output, shape index: {}]  }
   0x1   :  { %v19_v0 = vld [vmem:[%s991_s0 + $0x8] sm:$0xff]  ;;  %v18_v1 = vld [vmem:[%s991_s0] sm:$0xff]  ;;  %s697_s21 = smov 112   ;;  %s698_s22 = smov 113   ;;  %519 = vmatprep.mubr.bf16.mxu0 %v703_v4  ;;  %560 = vmatprep.mubr.bf16.mxu1 %v703_v4 }
   0x2   :  { %391 = vrot.lane.b32.xlu1 %v19_v0, %s695_s19  ;;  %229 = vst [vmem:[#allocation2 + $0x28] sm:$0xf] %v19_v0  ;;  %387 = vrot.lane.b32.xlu0 %v18_v1, %s695_s19  ;;  %227 = vst [vmem:[#allocation2 + $0x8] sm:$0xf] %v18_v1  ;;  %v22_v2 = vcombine.high %v18_v1, %v18_v1  ;;  %v23_v3 = vcombine.high %v19_v0, %v19_v0  ;;  %s699_s0 = smov 16   ;;  %s700_s23 = smov 1  }
   0x3   :  { %s701_s24 = smov 17   ;;  %s702_s25 = smov 15   ;;  %671 = vset.pattern.permute.xlu0 %v703_v4  ;;  %v744_v5 = vld [vmem:[%s992_s2] sm:$0xff]  ;;  %v44_v7 = vshrl.u32 %v34_v6, 7  ;;  %v747_v8 = vand.u32 127, %v34_v6 }
   0x4   :  { %228 = vst [vmem:[#allocation2 + $0x88] sm:$0xf] %v22_v2  ;;  %230 = vst [vmem:[#allocation2 + $0x40] sm:$0xf] %v23_v3 }
   0x5   :  { %v749_v9 = vsub.s32 0, %v44_v7  ;;  %v751_v10 = vsub.s32 1, %v44_v7  ;;  %v756_v11 = vld [vmem:[%s993_s3 + $0x7] ss:$8 sm:$0xf]  ;;  %vm395_vm0 = vcmp.lt.s32.totalorder %v747_v8, 111 }
   0x6   :  { %233 = vrot.lane.b32.xlu1 %v22_v2, %s696_s20  ;;  %389 = vrot.lane.b32.xlu0 %v22_v2, %s695_s19  ;;  %v766_v16 = vld [vmem:[%s993_s3 + $0x4] ss:$8 sm:$0xf]  ;;  %vm239_vm1 = vcmp.lt.s32.totalorder %v747_v8, 127  ;;  %vm339_vm2 = vcmp.lt.s32.totalorder %v747_v8, 112  ;;  %v800_v36 = vsub.s32 2, %v44_v7 }
   0x7   :  { %v406_v14 = vrot.slane %v756_v11, %v749_v9  ;;  %v410_v15 = vrot.slane %v756_v11, %v751_v10  ;;  %v254_v23 = vrot.slane %v766_v16, %v751_v10  ;;  %v778_v24 = vld [vmem:[%s993_s3 + $0x6] ss:$8 sm:$0xf]  ;;  %v250_v29 = vrot.slane %v766_v16, %v749_v9  ;;  %v809_v41 = vld [vmem:[%s993_s3 + $0x5] ss:$8 sm:$0xf] }
   0x8   :  { %v354_v30 = vrot.slane %v778_v24, %v751_v10  ;;  %v350_v39 = vrot.slane %v778_v24, %v749_v9  ;;  %v804_v40 = vsub.s32 3, %v44_v7  ;;  %v414_v51 = vrot.slane %v756_v11, %v800_v36 }
   0x9   :  { %vm295_vm4 = vcmp.lt.s32.totalorder %v747_v8, 113  ;;  %v310_v55 = vrot.slane %v809_v41, %v751_v10  ;;  %vm79_vm5 = vcmp.lt.s32.totalorder %v747_v8, 16  ;;  %vm179_vm6 = vcmp.lt.s32.totalorder %v747_v8, 1 }
   0xa   :  { %333 = vrot.lane.b32.xlu1 %v22_v2, %s697_s21  ;;  %235 = vrot.lane.b32.xlu0 %v19_v0, %s696_s20  ;;  %v418_v54 = vrot.slane %v756_v11, %v804_v40  ;;  %vm36_vm7 = vcmp.lt.s32.totalorder %v747_v8, 17  ;;  %vm135_vm8 = vcmp.lt.s32.totalorder %v747_v8, 15 }
   0xe   :  { %231 = vrot.lane.b32.xlu1 %v18_v1, %s696_s20  ;;  %335 = vrot.lane.b32.xlu0 %v19_v0, %s697_s21 }
  0x12   :  { %289 = vrot.lane.b32.xlu1 %v22_v2, %s698_s22  ;;  %331 = vrot.lane.b32.xlu0 %v18_v1, %s697_s21 }
  0x16   :  { %393 = vrot.lane.b32.xlu1 %v23_v3, %s695_s19  ;;  %291 = vrot.lane.b32.xlu0 %v19_v0, %s698_s22 }
  0x1a   :  { %71 = vrot.lane.b32.xlu1 %v18_v1, %s699_s0  ;;  %287 = vrot.lane.b32.xlu0 %v18_v1, %s698_s22 }
  0x1e   :  { %171 = vrot.lane.b32.xlu1 %v18_v1, %s700_s23  ;;  %73 = vrot.lane.b32.xlu0 %v22_v2, %s699_s0 }
  0x22   :  { %237 = vrot.lane.b32.xlu1 %v23_v3, %s696_s20  ;;  %173 = vrot.lane.b32.xlu0 %v22_v2, %s700_s23 }
  0x26   :  { %77 = vrot.lane.b32.xlu1 %v23_v3, %s699_s0  ;;  %337 = vrot.lane.b32.xlu0 %v23_v3, %s697_s21 }
  0x2a   :  { %26 = vrot.lane.b32.xlu1 %v18_v1, %s701_s24  ;;  %177 = vrot.lane.b32.xlu0 %v23_v3, %s700_s23 }
  0x2e   :  { %127 = vrot.lane.b32.xlu1 %v18_v1, %s702_s25  ;;  %28 = vrot.lane.b32.xlu0 %v22_v2, %s701_s24  ;;  %v306_v1 = vrot.slane %v809_v41, %v749_v9 }
  0x32   :  { %293 = vrot.lane.b32.xlu1 %v23_v3, %s698_s22  ;;  %129 = vrot.lane.b32.xlu0 %v22_v2, %s702_s25  ;;  %v839_v2 = vld [vmem:[%s993_s3 + $0x1] ss:$8 sm:$0xf] }
  0x33   :  { %v94_v11 = vrot.slane %v839_v2, %v751_v10 }
  0x36   :  { %133 = vrot.lane.b32.xlu1 %v23_v3, %s702_s25  ;;  %32 = vrot.lane.b32.xlu0 %v23_v3, %s701_s24 }
  0x3a   :  { %175 = vrot.lane.b32.xlu1 %v19_v0, %s700_s23  ;;  %75 = vrot.lane.b32.xlu0 %v19_v0, %s699_s0 }
  0x3e   :  { %131 = vrot.lane.b32.xlu1 %v19_v0, %s702_s25  ;;  %30 = vrot.lane.b32.xlu0 %v19_v0, %s701_s24 }
  0x42   :  { %467 = vperm.xlu0 %671, %v744_v5  }
  0x74   :  { %v392_v12 = vpop.permute.xlu1 %391  ;;  %v388_v13 = vpop.permute.xlu0 %387 }
  0x78   :  { %v234_v17 = vpop.permute.xlu1 %233  ;;  %v390_v18 = vpop.permute.xlu0 %389 }
  0x79   :  { %v397_v19 = vsel %vm395_vm0, %v390_v18, %v392_v12  ;;  %v398_v20 = vsel %vm395_vm0, %v388_v13, %v390_v18 }
  0x7a   :  { %v423_v21 = vmul.f32 %v406_v14, %v398_v20  ;;  %v424_v22 = vmul.f32 %v410_v15, %v397_v19  ;;  %v262_v19 = vrot.slane %v766_v16, %v804_v40 }
  0x7c   :  { %427 = vst [vmem:[#allocation2 + $0x20] sm:$0xf] %v423_v21  ;;  %428 = vst [vmem:[#allocation2 + $0x48] sm:$0xf] %v424_v22  ;;  %v334_v25 = vpop.permute.xlu1 %333  ;;  %v780_v26 = vpop.permute.xlu0 %235 }
  0x7d   :  { %v241_v27 = vsel %vm239_vm1, %v234_v17, %v780_v26 }
  0x7e   :  { %v268_v28 = vmul.f32 %v254_v23, %v241_v27  ;;  %v90_v27 = vrot.slane %v839_v2, %v749_v9 }
  0x80   :  { %v276_v31 = vrot.slane %v268_v28, 4  ;;  %v790_v32 = vpop.permute.xlu1 %231  ;;  %v792_v33 = vpop.permute.xlu0 %335  ;;  %v358_v28 = vrot.slane %v778_v24, %v800_v36 }
  0x81   :  { %v242_v34 = vsel %vm239_vm1, %v790_v32, %v234_v17  ;;  %v341_v35 = vsel %vm339_vm2, %v334_v25, %v792_v33  ;;  %v258_v17 = vrot.slane %v766_v16, %v800_v36 }
  0x82   :  { %284 = vst [vmem:[#allocation2 + $0x88] sm:$0xf0] %v276_v31  ;;  %v267_v37 = vmul.f32 %v250_v29, %v242_v34  ;;  %v368_v38 = vmul.f32 %v354_v30, %v341_v35 }
  0x83   :  { %v448_v42 = vld [vmem:[#allocation2 + $0x48] sm:$0xf]  ;;  %v447_v43 = vld [vmem:[#allocation2 + $0x20] sm:$0xf] }
  0x84   :  { %v275_v44 = vrot.slane %v267_v37, 4  ;;  %v376_v45 = vrot.slane %v368_v38, 4  ;;  %v290_v46 = vpop.permute.xlu1 %289  ;;  %v811_v47 = vpop.permute.xlu0 %331  ;;  %v460_v48 = vpack.c.bf16 %v448_v42, %v448_v42  ;;  %v459_v49 = vpack.c.bf16 %v447_v43, %v447_v43 }
  0x85   :  { %v342_v50 = vsel %vm339_vm2, %v811_v47, %v334_v25  ;;  %v362_v42 = vrot.slane %v778_v24, %v804_v40 }
  0x86   :  { %283 = vst [vmem:[#allocation2 + $0x8] sm:$0xf0] %v275_v44  ;;  %384 = vst [vmem:[#allocation2 + $0x10] sm:$0xf0] %v376_v45  ;;  %v367_v52 = vmul.f32 %v350_v39, %v342_v50  ;;  %654 = vmatprep.subr.msk.bf16.mxu0 %vm474_vm3, %v460_v48  ;;  %v476_v53 = vsel %vm474_vm3, %v459_v49, 0 }
  0x87   :  { %498 = vmatpush1.bf16.msra.mxu0 %v476_v53 }
  0x88   :  { %v375_v56 = vrot.slane %v367_v52, 4  ;;  %v394_v57 = vpop.permute.xlu1 %393  ;;  %v825_v58 = vpop.permute.xlu0 %291 }
  0x89   :  { %v396_v59 = vsel %vm395_vm0, %v392_v12, %v394_v57  ;;  %v399_v60 = vsel %vm395_vm0, %v394_v57, %v388_v13  ;;  %v297_v61 = vsel %vm295_vm4, %v290_v46, %v825_v58  ;;  %v852_v12 = vld [vmem:[%s993_s3 + $0x3] ss:$8 sm:$0xf] }
  0x8a   :  { %383 = vst [vmem:[#allocation2 + $0x58] sm:$0xf0] %v375_v56  ;;  %v425_v62 = vmul.f32 %v414_v51, %v396_v59  ;;  %v426_v63 = vmul.f32 %v418_v54, %v399_v60  ;;  %v324_v0 = vmul.f32 %v310_v55, %v297_v61  ;;  %v194_v20 = vrot.slane %v852_v12, %v751_v10  ;;  %v440_v21 = vld [vmem:[#allocation2 + $0x88] sm:$0xff] }
  0x8b   :  { %v190_v60 = vrot.slane %v852_v12, %v749_v9  ;;  %v901_v61 = vld [vmem:[%s993_s3] ss:$8 sm:$0xf] }
  0x8c   :  { %429 = vst [vmem:[#allocation2 + $0x70] sm:$0xf] %v425_v62  ;;  %430 = vst [vmem:[#allocation2 + $0x90] sm:$0xf] %v426_v63  ;;  %v72_v3 = vpop.permute.xlu1 %71  ;;  %v841_v4 = vpop.permute.xlu0 %287 }
  0x8d   :  { %328 = vst [vmem:[#allocation2 + $0x10] sm:$0xf] %v324_v0  ;;  %v298_v6 = vsel %vm295_vm4, %v841_v4, %v290_v46  ;;  %v439_v46 = vld [vmem:[#allocation2 + $0x8] sm:$0xff] }
  0x8e   :  { %v323_v7 = vmul.f32 %v306_v1, %v298_v6  ;;  %v50_v6 = vrot.slane %v901_v61, %v751_v10 }
  0x90   :  { %327 = vst [vmem:[#allocation2 + $0x58] sm:$0xf] %v323_v7  ;;  %v172_v13 = vpop.permute.xlu1 %171  ;;  %v854_v14 = vpop.permute.xlu0 %73  ;;  %v911_v7 = vld [vmem:[%s993_s3 + $0x2] ss:$8 sm:$0xf] }
  0x91   :  { %v82_v15 = vsel %vm79_vm5, %v72_v3, %v854_v14 }
  0x92   :  { %v108_v18 = vmul.f32 %v94_v11, %v82_v15 }
  0x93   :  { %v450_v23 = vld [vmem:[#allocation2 + $0x90] sm:$0xf] }
  0x94   :  { %v444_v22 = vld [vmem:[#allocation2 + $0x10] sm:$0xff]  ;;  %v116_v29 = vrot.slane %v108_v18, 4  ;;  %v238_v30 = vpop.permute.xlu1 %237  ;;  %v870_v31 = vpop.permute.xlu0 %173  ;;  %v462_v34 = vpack.c.bf16 %v450_v23, %v450_v23  ;;  %v314_v18 = vrot.slane %v809_v41, %v800_v36 }
  0x95   :  { %v449_v25 = vld [vmem:[#allocation2 + $0x70] sm:$0xf]  ;;  %v456_v16 = vpack.c.bf16 %v444_v22, %v440_v21  ;;  %v240_v37 = vsel %vm239_vm1, %v780_v26, %v238_v30  ;;  %v243_v38 = vsel %vm239_vm1, %v238_v30, %v790_v32  ;;  %v182_v39 = vsel %vm179_vm6, %v172_v13, %v870_v31 }
  0x96   :  { %v461_v35 = vpack.c.bf16 %v449_v25, %v449_v25  ;;  %124 = vst [vmem:[#allocation2 + $0x38] sm:$0xf0] %v116_v29  ;;  %v269_v43 = vmul.f32 %v258_v17, %v240_v37  ;;  %v270_v44 = vmul.f32 %v262_v19, %v243_v38  ;;  %v208_v45 = vmul.f32 %v194_v20, %v182_v39 }
  0x97   :  { %499 = vmatprep.subr.bf16.mxu0 %v456_v16  ;;  %656 = vmatprep.subr.msk.bf16.mxu1 %vm474_vm3, %v462_v34  ;;  %v443_v48 = vld [vmem:[#allocation2 + $0x58] sm:$0xff]  ;;  %v318_v20 = vrot.slane %v809_v41, %v804_v40  ;;  %v150_v21 = vrot.slane %v911_v7, %v751_v10  ;;  %v146_v41 = vrot.slane %v911_v7, %v749_v9 }
  0x98   :  { %v482_v26 = vsel %vm474_vm3, %v461_v35, 0  ;;  %v277_v32 = vrot.slane %v269_v43, 4  ;;  %v278_v49 = vrot.slane %v270_v44, 4  ;;  %v216_v50 = vrot.slane %v208_v45, 4  ;;  %v885_v51 = vpop.permute.xlu1 %77  ;;  %v338_v52 = vpop.permute.xlu0 %337 }
  0x99   :  { %539 = vmatpush1.bf16.msra.mxu1 %v482_v26  ;;  %v455_v53 = vpack.c.bf16 %v443_v48, %v439_v46  ;;  %v83_v24 = vsel %vm79_vm5, %v885_v51, %v72_v3  ;;  %v340_v54 = vsel %vm339_vm2, %v792_v33, %v338_v52  ;;  %v343_v55 = vsel %vm339_vm2, %v338_v52, %v811_v47 }
  0x9a   :  { %285 = vst [vmem:[#allocation2 + $0x28] sm:$0xf0] %v277_v32  ;;  %286 = vst [vmem:[#allocation2 + $0x40] sm:$0xf0] %v278_v49  ;;  %v107_v56 = vmul.f32 %v90_v27, %v83_v24  ;;  %v369_v57 = vmul.f32 %v358_v28, %v340_v54  ;;  %v370_v59 = vmul.f32 %v362_v42, %v343_v55 }
  0x9b   :  { %224 = vst [vmem:[#allocation2 + $0x68] sm:$0xf0] %v216_v50  ;;  %500 = vmatpush1.bf16.msra.mxu0 %v455_v53  ;;  %v46_v16 = vrot.slane %v901_v61, %v749_v9  ;;  %v198_v37 = vrot.slane %v852_v12, %v800_v36  ;;  %v202_v38 = vrot.slane %v852_v12, %v804_v40 }
  0x9c   :  { %v115_v33 = vrot.slane %v107_v56, 4  ;;  %v377_v62 = vrot.slane %v369_v57, 4  ;;  %v378_v63 = vrot.slane %v370_v59, 4  ;;  %v27_v0 = vpop.permute.xlu1 %26  ;;  %v178_v47 = vpop.permute.xlu0 %177  ;;  %v98_v9 = vrot.slane %v839_v2, %v800_v36 }
  0x9d   :  { %v183_v1 = vsel %vm179_vm6, %v178_v47, %v172_v13  ;;  %v102_v43 = vrot.slane %v839_v2, %v804_v40  ;;  %v154_v26 = vrot.slane %v911_v7, %v800_v36  ;;  %v158_v46 = vrot.slane %v911_v7, %v804_v40 }
  0x9e   :  { %123 = vst [vmem:[#allocation2] sm:$0xf0] %v115_v33  ;;  %385 = vst [vmem:[#allocation2 + $0x98] sm:$0xf0] %v377_v62  ;;  %v207_v3 = vmul.f32 %v190_v60, %v183_v1  ;;  %v54_v12 = vrot.slane %v901_v61, %v800_v36  ;;  %v58_v48 = vrot.slane %v901_v61, %v804_v40 }
  0x9f   :  { %386 = vst [vmem:[#allocation2 + $0x60] sm:$0xf0] %v378_v63 }
  0xa0   :  { %v215_v11 = vrot.slane %v207_v3, 4  ;;  %v128_v15 = vpop.permute.xlu1 %127  ;;  %v29_v17 = vpop.permute.xlu0 %28 }
  0xa1   :  { %v39_v13 = vsel %vm36_vm7, %v27_v0, %v29_v17  ;;  %v441_v7 = vld [vmem:[#allocation2 + $0x28] sm:$0xff] }
  0xa2   :  { %223 = vst [vmem:[#allocation2 + $0x30] sm:$0xf0] %v215_v11  ;;  %v64_v19 = vmul.f32 %v50_v6, %v39_v13  ;;  %v442_v6 = vld [vmem:[#allocation2 + $0x40] sm:$0xff] }
  0xa4   :  { %68 = vst [vmem:[#allocation2 + $0x38] sm:$0xf] %v64_v19  ;;  %v294_v22 = vpop.permute.xlu1 %293  ;;  %v130_v23 = vpop.permute.xlu0 %129 }
  0xa5   :  { %v296_v25 = vsel %vm295_vm4, %v825_v58, %v294_v22  ;;  %v299_v27 = vsel %vm295_vm4, %v294_v22, %v841_v4  ;;  %v138_v28 = vsel %vm135_vm8, %v128_v15, %v130_v23 }
  0xa6   :  { %v325_v29 = vmul.f32 %v314_v18, %v296_v25  ;;  %v326_v30 = vmul.f32 %v318_v20, %v299_v27  ;;  %v164_v10 = vmul.f32 %v150_v21, %v138_v28 }
  0xa8   :  { %329 = vst [vmem:[#allocation2 + $0x98] sm:$0xf] %v325_v29  ;;  %330 = vst [vmem:[#allocation2 + $0x60] sm:$0xf] %v326_v30  ;;  %v134_v58 = vpop.permute.xlu1 %133  ;;  %v33_v34 = vpop.permute.xlu0 %32 }
  0xa9   :  { %168 = vst [vmem:[#allocation2 + $0x68] sm:$0xf] %v164_v10  ;;  %v139_v4 = vsel %vm135_vm8, %v134_v58, %v128_v15  ;;  %v40_v35 = vsel %vm36_vm7, %v33_v34, %v27_v0 }
  0xaa   :  { %v163_v39 = vmul.f32 %v146_v41, %v139_v4  ;;  %v63_v42 = vmul.f32 %v46_v16, %v40_v35 }
  0xab   :  { %v432_v3 = vld [vmem:[#allocation2 + $0x38] sm:$0xff] }
  0xac   :  { %167 = vst [vmem:[#allocation2 + $0x30] sm:$0xf] %v163_v39  ;;  %67 = vst [vmem:[#allocation2] sm:$0xf] %v63_v42  ;;  %v176_v44 = vpop.permute.xlu1 %175  ;;  %v76_v45 = vpop.permute.xlu0 %75 }
  0xad   :  { %v180_v32 = vsel %vm179_vm6, %v176_v44, %v178_v47  ;;  %v181_v2 = vsel %vm179_vm6, %v870_v31, %v176_v44  ;;  %v80_v49 = vsel %vm79_vm5, %v76_v45, %v885_v51  ;;  %v81_v50 = vsel %vm79_vm5, %v854_v14, %v76_v45 }
  0xae   :  { %v209_v52 = vmul.f32 %v198_v37, %v181_v2  ;;  %v210_v36 = vmul.f32 %v202_v38, %v180_v32  ;;  %v109_v53 = vmul.f32 %v98_v9, %v81_v50  ;;  %v110_v24 = vmul.f32 %v102_v43, %v80_v49 }
  0xaf   :  { %v446_v31 = vld [vmem:[#allocation2 + $0x60] sm:$0xff]  ;;  %v445_v61 = vld [vmem:[#allocation2 + $0x98] sm:$0xff]  ;;  %v704_v2 = vmov 1  }
  0xb0   :  { %v436_v40 = vld [vmem:[#allocation2 + $0x68] sm:$0xff]  ;;  %v217_v54 = vrot.slane %v209_v52, 4  ;;  %v218_v55 = vrot.slane %v210_v36, 4  ;;  %v117_v56 = vrot.slane %v109_v53, 4  ;;  %v118_v57 = vrot.slane %v110_v24, 4  ;;  %v132_v59 = vpop.permute.xlu1 %131  ;;  %v31_v60 = vpop.permute.xlu0 %30  ;;  %672 = vset.pattern.permute.xlu0 %v704_v2 }
  0xb1   :  { %v136_v51 = vsel %vm135_vm8, %v132_v59, %v134_v58  ;;  %v137_v33 = vsel %vm135_vm8, %v130_v23, %v132_v59  ;;  %v37_v14 = vsel %vm36_vm7, %v31_v60, %v33_v34  ;;  %v38_v62 = vsel %vm36_vm7, %v29_v17, %v31_v60  ;;  %v463_v17 = vld [vmem:[%s994_s1] sm:$0xf] }
  0xb2   :  { %225 = vst [vmem:[#allocation2 + $0x78] sm:$0xf0] %v217_v54  ;;  %226 = vst [vmem:[#allocation2 + $0x80] sm:$0xf0] %v218_v55  ;;  %v165_v63 = vmul.f32 %v154_v26, %v137_v33  ;;  %v166_v0 = vmul.f32 %v158_v46, %v136_v51  ;;  %v65_v47 = vmul.f32 %v54_v12, %v38_v62  ;;  %v705_v54 = vmov 2  }
  0xb3   :  { %125 = vst [vmem:[#allocation2 + $0x50] sm:$0xf0] %v117_v56  ;;  %126 = vst [vmem:[#allocation2 + $0x18] sm:$0xf0] %v118_v57  ;;  %v66_v1 = vmul.f32 %v58_v48, %v37_v14  ;;  %v452_v11 = vpack.c.bf16 %v436_v40, %v432_v3  ;;  %v458_v15 = vpack.c.bf16 %v446_v31, %v442_v6  ;;  %v431_v18 = vld [vmem:[#allocation2] sm:$0xff]  ;;  %v435_v19 = vld [vmem:[#allocation2 + $0x30] sm:$0xff]  ;;  %673 = vset.pattern.permute.xlu1 %v705_v54 }
  0xb4   :  { %v457_v13 = vpack.c.bf16 %v445_v61, %v441_v7  ;;  %169 = vst [vmem:[#allocation2 + $0x78] sm:$0xf] %v165_v63  ;;  %170 = vst [vmem:[#allocation2 + $0x80] sm:$0xf] %v166_v0  ;;  %v451_v8 = vpack.c.bf16 %v435_v19, %v431_v18 }
  0xb5   :  { %69 = vst [vmem:[#allocation2 + $0x50] sm:$0xf] %v65_v47  ;;  %70 = vst [vmem:[#allocation2 + $0x18] sm:$0xf] %v66_v1  ;;  %501 = vmatprep.subr.bf16.mxu0 %v452_v11  ;;  %540 = vmatprep.subr.bf16.mxu1 %v458_v15 }
  0xb6   :  { %541 = vmatpush1.bf16.msra.mxu1 %v457_v13  ;;  %502 = vmatpush1.bf16.msra.mxu0 %v451_v8 }
  0xb9   :  { %655 = vmatmul.mubr.msk.bf16.vlgmr.msra.gmra.mxu0 %vm470_vm9, %v463_v17 }
  0xbb   :  { %v438_v21 = vld [vmem:[#allocation2 + $0x80] sm:$0xff]  ;;  %v437_v25 = vld [vmem:[#allocation2 + $0x78] sm:$0xff] }
  0xbc   :  { %v434_v20 = vld [vmem:[#allocation2 + $0x18] sm:$0xff]  ;;  %v433_v22 = vld [vmem:[#allocation2 + $0x50] sm:$0xff] }
  0xbd   :  { %v454_v23 = vpack.c.bf16 %v438_v21, %v434_v20  ;;  %v453_v27 = vpack.c.bf16 %v437_v25, %v433_v22  ;;  %v468_v41 = vpop.permute.xlu0 %467 }
  0xbf   :  { %542 = vmatprep.subr.bf16.mxu1 %v454_v23 }
  0xc0   :  { %543 = vmatpush1.bf16.msra.mxu1 %v453_v27 }
  0xc3   :  { %657 = vmatmul.mubr.msk.bf16.vlgmr.msra.gmra.mxu1 %vm470_vm9, %v463_v17 }
 0x179   :  { %v521_v28 = vpop.f32.mrf.mxu0 }
 0x17a   :  { %v522_v10 = vadd.f32 %v521_v28, %v468_v41 }
 0x17b   :  { %v523_v29 = vpop.f32.mrf.mxu0 }
 0x17c   :  { %v524_v16 = vadd.f32 %v523_v29, %v468_v41  ;;  %v575_v34 = vmul.f32 %v522_v10, %v522_v10 }
 0x17d   :  { %v525_v30 = vpop.f32.mrf.mxu0 }
 0x17e   :  { %v576_v4 = vmul.f32 %v524_v16, %v524_v16  ;;  %v569_v38 = vadd.f32 %v524_v16, %v522_v10 }
 0x17f   :  { %v526_v58 = vpop.f32.mrf.mxu0 }
 0x180   :  { %v579_v44 = vadd.f32 %v576_v4, %v575_v34 }
 0x183   :  { %v562_v35 = vpop.f32.mrf.mxu1 }
 0x184   :  { %v563_v37 = vadd.f32 %v562_v35, %v468_v41 }
 0x185   :  { %v564_v39 = vpop.f32.mrf.mxu1 }
 0x186   :  { %v577_v42 = vmul.f32 %v563_v37, %v563_v37  ;;  %v565_v9 = vadd.f32 %v564_v39, %v468_v41  ;;  %v570_v43 = vadd.f32 %v569_v38, %v563_v37 }
 0x187   :  { %v566_v45 = vpop.f32.mrf.mxu1 }
 0x188   :  { %v571_v26 = vadd.f32 %v570_v43, %v565_v9  ;;  %v578_v46 = vmul.f32 %v565_v9, %v565_v9  ;;  %v580_v12 = vadd.f32 %v579_v44, %v577_v42 }
 0x189   :  { %v567_v48 = vpop.f32.mrf.mxu1 }
 0x18a   :  { %572 = vadd.xlane.f32.xlu1 %v571_v26  ;;  %v581_v32 = vadd.f32 %v580_v12, %v578_v46 }
 0x18c   :  { %582 = vadd.xlane.f32.xlu0 %v581_v32 }
 0x213   :  { %v573_v49 = vpop.xlane.xlu1 %572 }
 0x214   :  { %v574_v50 = vmul.f32 0.001953125, %v573_v49 }
 0x215   :  { %v583_v52 = vpop.xlane.xlu0 %582 }
 0x216   :  { %v585_v36 = vmul.f32 %v574_v50, %v574_v50  ;;  %v584_v53 = vmul.f32 0.001953125, %v583_v52 }
 0x218   :  { %v586_v24 = vsub.f32 %v584_v53, %v585_v36 }
 0x21a   :  { %v587_v40 = vadd.f32 1e-05, %v586_v24 }
 0x21c   :  { %677 = vrsqrt.f32 %v587_v40 }
 0x229   :  { %v678_v55 = vpop.eup %677 }
 0x22a   :  { %v589_v56 = vmul.f32 %v678_v55, %v744_v5 }
 0x22c   :  { %598 = vperm.xlu0 %672, %v589_v56   ;;  %v590_v57 = vmul.f32 %v589_v56, %v574_v50 }
 0x22e   :  { %592 = vrot.lane.b32.xlu1 %v590_v57, %s700_s23 }
 0x230   :  { %674 = vset.pattern.permute.xlu0 %v705_v54 }
 0x2a0   :  { %v593_v59 = vpop.permute.xlu1 %592 }
 0x2a1   :  { %v595_v60 = vsub.f32 %v744_v5, %v593_v59 }
 0x2a3   :  { %607 = vperm.xlu1 %673, %v595_v60  }
 0x2a7   :  { %v599_v31 = vpop.permute.xlu0 %598 }
 0x2a8   :  { %v601_v61 = vmul.f32 %v599_v31, %v522_v10  ;;  %v602_v51 = vmul.f32 %v599_v31, %v524_v16  ;;  %v603_v33 = vmul.f32 %v599_v31, %v563_v37  ;;  %v604_v14 = vmul.f32 %v599_v31, %v565_v9 }
 0x31e   :  { %v608_v62 = vpop.permute.xlu1 %607 }
 0x31f   :  { %v610_v63 = vadd.f32 %v608_v62, %v601_v61  ;;  %v611_v0 = vadd.f32 %v608_v62, %v602_v51  ;;  %v612_v47 = vadd.f32 %v608_v62, %v603_v33  ;;  %v613_v1 = vadd.f32 %v608_v62, %v604_v14 }
 0x321   :  { %v614_v3 = vsub.f32 0.0, %v610_v63  ;;  %v615_v6 = vsub.f32 0.0, %v611_v0  ;;  %v616_v7 = vsub.f32 0.0, %v612_v47  ;;  %v617_v11 = vsub.f32 0.0, %v613_v1 }
 0x323   :  { %v618_v15 = vmul.f32 1.442695, %v614_v3  ;;  %v620_v13 = vmul.f32 1.442695, %v615_v6  ;;  %v622_v18 = vmul.f32 1.442695, %v616_v7 }
 0x324   :  { %v624_v19 = vmul.f32 1.442695, %v617_v11 }
 0x325   :  { %679 = vpow2.f32 %v618_v15 }
 0x326   :  { %681 = vpow2.f32 %v620_v13 }
 0x327   :  { %683 = vpow2.f32 %v622_v18 }
 0x328   :  { %685 = vpow2.f32 %v624_v19 }
 0x332   :  { %v680_v5 = vpop.eup %679 }
 0x333   :  { %v682_v8 = vpop.eup %681  ;;  %v626_v17 = vadd.f32 1.0, %v680_v5 }
 0x334   :  { %v684_v20 = vpop.eup %683  ;;  %v627_v21 = vadd.f32 1.0, %v682_v8 }
 0x335   :  { %v686_v22 = vpop.eup %685  ;;  %v628_v23 = vadd.f32 1.0, %v684_v20  ;;  %687 = vrcp.f32 %v626_v17 }
 0x336   :  { %v629_v25 = vadd.f32 1.0, %v686_v22  ;;  %689 = vrcp.f32 %v627_v21 }
 0x337   :  { %691 = vrcp.f32 %v628_v23 }
 0x338   :  { %693 = vrcp.f32 %v629_v25 }
 0x342   :  { %v688_v27 = vpop.eup %687 }
 0x343   :  { %v690_v28 = vpop.eup %689  ;;  %v634_v41 = vmul.f32 %v688_v27, %v610_v63 }
 0x344   :  { %v692_v29 = vpop.eup %691  ;;  %v635_v30 = vmul.f32 %v690_v28, %v611_v0 }
 0x345   :  { %v694_v10 = vpop.eup %693  ;;  %v636_v16 = vmul.f32 %v692_v29, %v612_v47  ;;  %638 = vst [vmem:[%s995_s4] sm:$0xff] %v634_v41 }
 0x346   :  { %v637_v58 = vmul.f32 %v694_v10, %v613_v1  ;;  %639 = vst [vmem:[%s995_s4 + $0x8] sm:$0xff] %v635_v30 }
 0x347   :  { %658 = vst [vmem:[%s995_s4 + $0x10] sm:$0xff] %v636_v16 }
 0x348   :  { %659 = vst [vmem:[%s995_s4 + $0x18] sm:$0xff] %v637_v58 }

</bundles_post_ra>
